<compile_context>
chip_gen: v7x
topology: tpu7x:2x2x1
jax: 0.10.0
libtpu: 0.0.40
codegen_flags: <defaults>
</compile_context>

<pallas_src>
import functools

import jax
import jax.numpy as jnp
from jax import lax
from jax.experimental import pallas as pl
from jax.experimental.pallas import tpu as pltpu


_VMEM_LIMIT_BYTES = 32 * 1024 * 1024   # explicit scoped-VMEM limit, safe on v5e/v6e/v7x
_TILE_BUDGET_BYTES = 24 * 1024 * 1024  # target for double-buffered tiles


# ---------------------------------------------------------------------------
# Kernels
# ---------------------------------------------------------------------------
def _embed_kernel_fused(p_ref, w_ref, pb_ref, o_ref):
    """Single-K-step patch embedding: out = patches @ W + (pos + bias).

    Block shapes:
      p_ref  : (1, tp, K)   compute dtype (bf16 by default)
      w_ref  : (K, tn)      compute dtype
      pb_ref : (tp, tn)     float32  (pos_emb + conv bias, pre-fused in glue)
      o_ref  : (1, tp, tn)  output dtype
    """
    acc = jnp.dot(p_ref[0], w_ref[...], preferred_element_type=jnp.float32)
    o_ref[0] = (acc + pb_ref[...]).astype(o_ref.dtype)


def _embed_kernel_splitk(p_ref, w_ref, pb_ref, o_ref, acc_ref):
    """K-tiled fallback (used only when a full-K tile would not fit VMEM)."""
    k = pl.program_id(3)

    @pl.when(k == 0)
    def _():
        acc_ref[...] = jnp.zeros_like(acc_ref)

    acc_ref[...] += jnp.dot(p_ref[0], w_ref[...],
                            preferred_element_type=jnp.float32)

    @pl.when(k == pl.num_programs(3) - 1)
    def _():
        o_ref[0] = (acc_ref[...] + pb_ref[...]).astype(o_ref.dtype)


# ---------------------------------------------------------------------------
# Tiling helpers
# ---------------------------------------------------------------------------
def _divisor_tiles(dim, align, pref):
    """Divisors of `dim` that are multiples of `align` and <= pref, descending."""
    cap = min(dim, pref)
    return [d for d in range(cap - cap % align, 0, -align) if dim % d == 0]


def _tile_footprint_bytes(tp, tk, tn, in_itemsize, out_itemsize, split_k):
    f = 2 * tp * tk * in_itemsize        # patches tile, double-buffered
    f += 2 * tk * tn * in_itemsize       # weight tile
    f += 2 * tp * tn * 4                 # pos+bias tile (f32)
    f += 2 * tp * tn * out_itemsize      # output tile
    if split_k:
        f += tp * tn * 4                 # f32 accumulator scratch
    return f


# ---------------------------------------------------------------------------
# Forward
# ---------------------------------------------------------------------------
@functools.partial(
    jax.jit, static_argnames=("patch_size", "compute_dtype", "max_tile_k"))
def embeddings_forward(x, conv_w, conv_b, pos_emb, *, patch_size,
                       compute_dtype=jnp.bfloat16, max_tile_k=None):
    """Forward pass of Embeddings (types=0).

    x:        (B, C, Z, X, Y)   float32, NCDHW like PyTorch
    conv_w:   (hidden, C, pz, px, py)
    conv_b:   (hidden,)
    pos_emb:  (1, n_patches, hidden)
    returns:  (B, n_patches, hidden)
    """
    B, C, Z, X, Y = x.shape
    pz, px, py = patch_size
    zz, xx, yy = Z // pz, X // px, Y // py
    n_patches = zz * xx * yy
    hidden = conv_w.shape[0]
    K = C * pz * px * py

    # --- glue: non-overlapping patch extraction -> (B, n_patches, K) ---------
    # Cast to the compute dtype *before* the transpose so the materialized
    # patch matrix costs half the HBM traffic (bf16).
    patches = x.astype(compute_dtype)
    patches = patches.reshape(B, C, zz, pz, xx, px, yy, py)
    patches = patches.transpose(0, 2, 4, 6, 1, 3, 5, 7)  # (B, zz, xx, yy, C, pz, px, py)
    patches = patches.reshape(B, n_patches, K)

    # Conv weight as (K, hidden); bias folded into the position table so the
    # kernel has one fewer input and no broadcast is ever materialized.
    w2d = conv_w.reshape(hidden, K).T.astype(compute_dtype)
    posb = (pos_emb.reshape(n_patches, hidden) + conv_b[None, :]).astype(jnp.float32)

    # --- tile selection (respect the (8,128) rule, stay inside VMEM budget) --
    in_it = jnp.dtype(compute_dtype).itemsize
    out_it = jnp.dtype(x.dtype).itemsize

    if hidden % 128 == 0:
        tn = _divisor_tiles(hidden, 128, 512)[0]
    else:
        # Full-extent N block.  For hidden < 128 this means masked stores;
        # acceptable for tiny hidden, and production hidden sizes are
        # multiples of 128 (lane-dense).
        tn = hidden

    tp_cands = _divisor_tiles(n_patches, 8, 512) if n_patches % 8 == 0 else [n_patches]
    if K % 128 == 0:
        k_cap = K if max_tile_k is None else max(128, min(K, max_tile_k))
        tk_cands = _divisor_tiles(K, 128, k_cap) or [K]
    else:
        tk_cands = [K]                   # only legal (full-extent) K tile

    tp, tk = tp_cands[-1], tk_cands[-1]  # fallback: smallest legal tiles
    for tp_c in tp_cands:                # prefer big patch tiles, then big K tiles
        found = False
        for tk_c in tk_cands:
            if _tile_footprint_bytes(tp_c, tk_c, tn, in_it, out_it,
                                     tk_c != K) <= _TILE_BUDGET_BYTES:
                tp, tk, found = tp_c, tk_c, True
                break
        if found:
            break

    single_k = (tk == K)
    out_shape = jax.ShapeDtypeStruct((B, n_patches, hidden), x.dtype)

    compiler_params = pltpu.CompilerParams(
        dimension_semantics=(("parallel", "parallel", "parallel")
                             if single_k else
                             ("parallel", "parallel", "parallel", "arbitrary")),
        vmem_limit_bytes=_VMEM_LIMIT_BYTES,
    )

    if single_k:
        grid = (B, n_patches // tp, hidden // tn)
        in_specs = [
            pl.BlockSpec((1, tp, K), lambda b, i, j: (b, i, 0)),   # patches
            pl.BlockSpec((K, tn), lambda b, i, j: (0, j)),         # weight
            pl.BlockSpec((tp, tn), lambda b, i, j: (i, j)),        # pos + bias
        ]
        out_specs = pl.BlockSpec((1, tp, tn), lambda b, i, j: (b, i, j))
        kernel = _embed_kernel_fused
        scratch = []
    else:
        grid = (B, n_patches // tp, hidden // tn, K // tk)
        in_specs = [
            pl.BlockSpec((1, tp, tk), lambda b, i, j, k: (b, i, k)),  # patches
            pl.BlockSpec((tk, tn), lambda b, i, j, k: (k, j)),        # weight
            pl.BlockSpec((tp, tn), lambda b, i, j, k: (i, j)),        # pos + bias
        ]
        out_specs = pl.BlockSpec((1, tp, tn), lambda b, i, j, k: (b, i, j))
        kernel = _embed_kernel_splitk
        scratch = [pltpu.VMEM((tp, tn), jnp.float32)]

    out = pl.pallas_call(
        kernel,
        out_shape=out_shape,
        grid_spec=pltpu.PrefetchScalarGridSpec(
            num_scalar_prefetch=0,
            grid=grid,
            in_specs=in_specs,
            out_specs=out_specs,
            scratch_shapes=scratch,
        ),
        compiler_params=compiler_params,
    )(patches, w2d, posb)

    return out


# ---------------------------------------------------------------------------
# Pure-JAX reference (matches PyTorch Conv3d with kernel==stride==patch_size)
# ---------------------------------------------------------------------------
def _reference_forward(x, conv_w, conv_b, pos_emb, patch_size):
    y = lax.conv_general_dilated(
        x, conv_w,
        window_strides=patch_size,
        padding="VALID",
        dimension_numbers=("NCDHW", "OIDHW", "NCDHW"),
    )
    y = y + conv_b.reshape(1, -1, 1, 1, 1)
    B, H = y.shape[0], y.shape[1]
    y = y.reshape(B, H, -1).transpose(0, 2, 1)  # (B, n_patches, hidden)
    return y + pos_emb


if __name__ == "__main__":
    # Small config consistent with the module:
    #   img_size=(8,16,16), patch_size=(4,8,8), in_channels=4, hidden_size=32
    B, C = 2, 4
    img_size = (8, 16, 16)
    patch_size = (4, 8, 8)
    hidden = 32
    zz = img_size[0] // patch_size[0]
    xx = img_size[1] // patch_size[1]
    yy = img_size[2] // patch_size[2]
    n_patches = zz * xx * yy

    key = jax.random.PRNGKey(0)
    kx, kw, kb, kp = jax.random.split(key, 4)
    x = jax.random.normal(kx, (B, C, *img_size), dtype=jnp.float32)
    conv_w = 0.05 * jax.random.normal(
        kw, (hidden, C, *patch_size), dtype=jnp.float32
    )
    conv_b = 0.1 * jax.random.normal(kb, (hidden,), dtype=jnp.float32)
    # nn.Parameter(torch.zeros(...)) in __init__; use small random values so
    # the add is exercised (deterministic via PRNGKey(0)).
    pos_emb = 0.02 * jax.random.normal(
        kp, (1, n_patches, hidden), dtype=jnp.float32
    )

    ref = _reference_forward(x, conv_w, conv_b, pos_emb, patch_size)

    # Default path: bf16 inputs, single-K fused kernel (bf16 -> looser tol).
    out = embeddings_forward(x, conv_w, conv_b, pos_emb, patch_size=patch_size)
    out = jax.block_until_ready(out)
    assert out.shape == (B, n_patches, hidden), out.shape
    assert jnp.allclose(out, ref, rtol=2e-2, atol=2e-2), "fused/bf16 mismatch"

    # Also exercise the split-K accumulator fallback (used for very large K)
    # in f32 for a tight check against the reference.
    out_sk = embeddings_forward(
        x, conv_w, conv_b, pos_emb, patch_size=patch_size,
        compute_dtype=jnp.float32, max_tile_k=256,
    )
    out_sk = jax.block_until_ready(out_sk)
    assert jnp.allclose(out_sk, ref, rtol=1e-4, atol=1e-4), "split-K mismatch"

    print("KERNEL_OK")
</pallas_src>

<mosaic_0001>
module attributes {stable_mosaic.version = 11 : i64} {
  func.func @_embed_kernel_fused(%arg0: i32, %arg1: i32, %arg2: i32, %arg3: memref<1x8x1024xbf16, #tpu.memory_space<vmem>>, %arg4: memref<1024x32xbf16, #tpu.memory_space<vmem>>, %arg5: memref<8x32xf32, #tpu.memory_space<vmem>>, %arg6: memref<1x8x32xf32, #tpu.memory_space<vmem>>) attributes {dimension_semantics = [#tpu.dimension_semantics<parallel>, #tpu.dimension_semantics<parallel>, #tpu.dimension_semantics<parallel>], iteration_bounds = array<i64: 2, 1, 1>, scalar_prefetch = 0 : i64, scratch_operands = 0 : i64, tpu.core_type = #tpu.core_type<tc>, window_params = [{transform_indices = @transform_0, window_bounds = array<i64: 1, 8, 1024>}, {transform_indices = @transform_1, window_bounds = array<i64: 1024, 32>}, {transform_indices = @transform_2, window_bounds = array<i64: 8, 32>}, {transform_indices = @transform_3, window_bounds = array<i64: 1, 8, 32>}]} {
    %c0 = arith.constant 0 : index
    %c0_0 = arith.constant 0 : index
    %c0_1 = arith.constant 0 : index
    %0 = vector.load %arg3[%c0, %c0_0, %c0_1] : memref<1x8x1024xbf16, #tpu.memory_space<vmem>>, vector<1x8x1024xbf16>
    %1 = vector.shape_cast %0 : vector<1x8x1024xbf16> to vector<8x1024xbf16>
    %c0_2 = arith.constant 0 : index
    %c0_3 = arith.constant 0 : index
    %2 = vector.load %arg4[%c0_2, %c0_3] : memref<1024x32xbf16, #tpu.memory_space<vmem>>, vector<1024x32xbf16>
    %cst = arith.constant dense<0.000000e+00> : vector<8x32xf32>
    %3 = tpu.matmul %1, %2, %cst {dimension_numbers = #tpu.dot_dimension_numbers<[1], [0], [0], [1], [0, 0, 1, 1], [], []>} : vector<8x1024xbf16>, vector<1024x32xbf16>, vector<8x32xf32> -> vector<8x32xf32>
    %c0_4 = arith.constant 0 : index
    %c0_5 = arith.constant 0 : index
    %4 = vector.load %arg5[%c0_4, %c0_5] : memref<8x32xf32, #tpu.memory_space<vmem>>, vector<8x32xf32>
    %5 = arith.addf %3, %4 : vector<8x32xf32>
    %c0_6 = arith.constant 0 : index
    %c0_7 = arith.constant 0 : index
    %c0_8 = arith.constant 0 : index
    %6 = vector.load %arg6[%c0_6, %c0_7, %c0_8] : memref<1x8x32xf32, #tpu.memory_space<vmem>>, vector<1x8x32xf32>
    %7 = vector.shape_cast %6 : vector<1x8x32xf32> to vector<8x32xf32>
    %8 = vector.shape_cast %5 : vector<8x32xf32> to vector<1x8x32xf32>
    tpu.vector_store %arg6[%c0_6, %c0_7, %c0_8], %8 {strides = array<i32>} : memref<1x8x32xf32, #tpu.memory_space<vmem>>, vector<1x8x32xf32>,
    return
  }
  func.func @transform_0(%arg0: i32, %arg1: i32, %arg2: i32) -> (i32, i32, i32) {
    %c0_i32 = arith.constant 0 : i32
    %c0_i32_0 = arith.constant 0 : i32
    return %arg0, %arg1, %c0_i32 : i32, i32, i32
  }
  func.func @transform_1(%arg0: i32, %arg1: i32, %arg2: i32) -> (i32, i32) {
    %c0_i32 = arith.constant 0 : i32
    %c0_i32_0 = arith.constant 0 : i32
    return %c0_i32, %arg2 : i32, i32
  }
  func.func @transform_2(%arg0: i32, %arg1: i32, %arg2: i32) -> (i32, i32) {
    %c0_i32 = arith.constant 0 : i32
    return %arg1, %arg2 : i32, i32
  }
  func.func @transform_3(%arg0: i32, %arg1: i32, %arg2: i32) -> (i32, i32, i32) {
    %c0_i32 = arith.constant 0 : i32
    return %arg0, %arg1, %arg2 : i32, i32, i32
  }
}

</mosaic_0001>

<bundles_post_ra>
// kernel: embeddings_forward.1
= control target key start
LH: loop header
LB: loop body
LE: loop exit
PB: predicated region body
PF: predicated region fallthrough
CT: control target
= control target key end

     0   :  { %8 = vsyncpa [#allocation3], 0  ;;  %s1805_s0 = inlined_call_operand.vmem [shape: bf16[2,8,1024], index: 0, kind: input, shape index: {}]   ;;  %s1806_s1 = inlined_call_operand.vmem [shape: bf16[1024,32], index: 1, kind: input, shape index: {}]   ;;  %s1807_s2 = inlined_call_operand.vmem [shape: f32[8,32], index: 2, kind: input, shape index: {}]   ;;  %s1808_s3 = inlined_call_operand.hbm [shape: f32[2,8,32], index: 3, kind: output, shape index: {}]  }
   0x1   :  { %10 = vsyncpa [#allocation3 + $0x1], 0  ;;  %s1492_s12 = smov 0   ;;  %s1494_s13 = smov 0  }
   0x2   :  { %s1496_s14 = smov 0   ;;  %s1498_s15 = smov 0  }
   0x3   :  { %s1500_s16 = smov 0   ;;  %s1502_s17 = smov 0  }
   0x4 LB: > { %s1089_s18 = sadd.s32 4294967295, %s1469_s17   ;;  %s1090_s19 = sadd.s32 4294967294, %s1469_s17   ;;  %s1469_s17 = sphi %s1502_s17, %s16_s17   ;;  %s1465_s16 = sphi %s1500_s16, %s1815_s16   ;;  %s1461_s15 = sphi %s1498_s15, %s1814_s15   ;;  %s1457_s14 = sphi %s1496_s14, %s1813_s14   ;;  %s1453_s13 = sphi %s1494_s13, %s1812_s13   ;;  %s1449_s12 = sphi %s1492_s12, %s1811_s12  }
   0x5   : > { %s35_s20 = sadd.s32 1, %s1465_s16  ;;  %s128_s21 = sadd.s32 1, %s1457_s14 }
   0x6   : > { %p37_p0 = scmp.ge.s32.totalorder %s35_s20, 2  ;;  %p138_p1 = scmp.ne.s32.totalorder %s1457_s14, %s1453_s13 }
   0x7   : > { %p139_p2 = scmp.eq.s32.totalorder %s1089_s18, 1  ;;  %p144_p3 = scmp.ne.s32.totalorder %s1453_s13, %s1449_s12 }
   0x8   : > { %s1817_s20 = smov (%p37_p0, %s35_s20), 0  ;;  %p145_p5 = scmp.eq.s32.totalorder %s1090_s19, 1 }
   0x9   : > { %p1532_p4 = por %p139_p2, %p138_p1  ;;  %s121_s23 = ssub.s32 %s1465_s16, %s1817_s20 }
   0xa   : > { %p1095_p6 = scmp.ge.s32.totalorder %s1469_s17, 1  ;;  %p126_p7 = scmp.eq.s32.totalorder %s121_s23, 0 }
   0xb   : > { %p1539_p8 = por %p145_p5, %p144_p3  ;;  %p192_p9 = scmp.lt.s32.totalorder %s1469_s17, 3 }
   0xc   : > { %s1545_s25 = scalar_select %p126_p7, %s1457_s14, %s128_s21  }
   0xd   : > { %p193_p10 = pnand %p1095_p6, %p192_p9 }
   0xe   : > { %v1319_v0 = vld [vmem:[%s1806_s1 + $0x40] sm:$0xff] (!%p193_p10)   ;;  %v1323_v4 = vld [vmem:[%s1806_s1 + $0x48] sm:$0xff] (!%p193_p10)   ;;  %v1327_v8 = vld [vmem:[%s1806_s1 + $0x50] sm:$0xff] (!%p193_p10)   ;;  %p231_p11 = scmp.lt.s32.totalorder (!%p193_p10), %s1461_s15, 1  ;;  %vm957_vm0 = vcmask (!%p193_p10), 261120  }
   0xf   : > { %196 = sbr.rel (%p193_p10) target bundleno = 313 (0x139), region = 32  ;;  %v1320_v1 = vld [vmem:[%s1806_s1 + $0xc0] sm:$0xff] (!%p193_p10)   ;;  %1176 = vmatprep.subr.bf16.mxu0 (!%p193_p10), %v1319_v0  ;;  %v1324_v5 = vld [vmem:[%s1806_s1 + $0xc8] sm:$0xff] (!%p193_p10)   ;;  %v1328_v9 = vld [vmem:[%s1806_s1 + $0xd0] sm:$0xff] (!%p193_p10)  }
  0x10   : > { %v1321_v2 = vld [vmem:[%s1806_s1] sm:$0xff] (!%p193_p10)   ;;  %1198 = vmatprep.subr.bf16.mxu1 (!%p193_p10), %v1320_v1  ;;  %v1325_v6 = vld [vmem:[%s1806_s1 + $0x8] sm:$0xff] (!%p193_p10)   ;;  %v1329_v10 = vld [vmem:[%s1806_s1 + $0x10] sm:$0xff] (!%p193_p10)  }
  0x11   : > { %v1322_v3 = vld [vmem:[%s1806_s1 + $0x80] sm:$0xff] (!%p193_p10)   ;;  %1177 = vmatpush3.bf16.msra.mxu0 (!%p193_p10), %v1321_v2  ;;  %v1326_v7 = vld [vmem:[%s1806_s1 + $0x88] sm:$0xff] (!%p193_p10)   ;;  %v1330_v11 = vld [vmem:[%s1806_s1 + $0x90] sm:$0xff] (!%p193_p10)  }
  0x12   : > { %1199 = vmatpush3.bf16.msra.mxu1 (!%p193_p10), %v1322_v3  ;;  %1178 = vmatprep.subr.bf16.mxu0 (!%p193_p10), %v1323_v4  ;;  %v1331_v12 = vld [vmem:[%s1806_s1 + $0x58] sm:$0xff] (!%p193_p10)   ;;  %v1335_v16 = vld [vmem:[%s1806_s1 + $0x60] sm:$0xff] (!%p193_p10)   ;;  %v1339_v20 = vld [vmem:[%s1806_s1 + $0x68] sm:$0xff] (!%p193_p10)  }
  0x13   : > { %1200 = vmatprep.subr.bf16.mxu1 (!%p193_p10), %v1324_v5  ;;  %v1332_v13 = vld [vmem:[%s1806_s1 + $0xd8] sm:$0xff] (!%p193_p10)   ;;  %v1336_v17 = vld [vmem:[%s1806_s1 + $0xe0] sm:$0xff] (!%p193_p10)   ;;  %v1340_v21 = vld [vmem:[%s1806_s1 + $0xe8] sm:$0xff] (!%p193_p10)  }
  0x14   : > { %v1333_v14 = vld [vmem:[%s1806_s1 + $0x18] sm:$0xff] (!%p193_p10)   ;;  %v1337_v18 = vld [vmem:[%s1806_s1 + $0x20] sm:$0xff] (!%p193_p10)   ;;  %v1341_v22 = vld [vmem:[%s1806_s1 + $0x28] sm:$0xff] (!%p193_p10)  }
  0x15   : > { %1179 = vmatpush3.bf16.msra.mxu0 (!%p193_p10), %v1325_v6  ;;  %v1334_v15 = vld [vmem:[%s1806_s1 + $0x98] sm:$0xff] (!%p193_p10)   ;;  %v1338_v19 = vld [vmem:[%s1806_s1 + $0xa0] sm:$0xff] (!%p193_p10)   ;;  %v1342_v23 = vld [vmem:[%s1806_s1 + $0xa8] sm:$0xff] (!%p193_p10)  }
  0x16   : > { %1201 = vmatpush3.bf16.msra.mxu1 %v1326_v7  ;;  %1180 = vmatprep.subr.bf16.mxu0 %v1327_v8  ;;  %s232_s11 = scalar_select %p231_p11, %s1461_s15, 1  ;;  %v1343_v24 = vld [vmem:[%s1806_s1 + $0x70] sm:$0xff]   ;;  %v1347_v28 = vld [vmem:[%s1806_s1 + $0x78] sm:$0xff]   ;;  %v1355_v38 = vld [vmem:[%s1806_s1 + $0x140] sm:$0xff]  }
  0x17   : > { %1202 = vmatprep.subr.bf16.mxu1 %v1328_v9  ;;  %v1344_v25 = vld [vmem:[%s1806_s1 + $0xf0] sm:$0xff]   ;;  %v1348_v29 = vld [vmem:[%s1806_s1 + $0xf8] sm:$0xff]   ;;  %v1356_v39 = vld [vmem:[%s1806_s1 + $0x1c0] sm:$0xff]  }
  0x18   : > { %v1345_v26 = vld [vmem:[%s1806_s1 + $0x30] sm:$0xff]   ;;  %s1175_s30 = sshll.u32 %s232_s11, 5  ;;  %v1349_v30 = vld [vmem:[%s1806_s1 + $0x38] sm:$0xff]   ;;  %v1357_v40 = vld [vmem:[%s1806_s1 + $0x100] sm:$0xff]  }
  0x19   : > { %1181 = vmatpush3.bf16.msra.mxu0 %v1329_v10  ;;  %v1346_v27 = vld [vmem:[%s1806_s1 + $0xb0] sm:$0xff]   ;;  %s1642_s19 = scalar_lea.vmem %s1805_s0, %s1175_s30  ;;  %v1350_v31 = vld [vmem:[%s1806_s1 + $0xb8] sm:$0xff]   ;;  %v1358_v41 = vld [vmem:[%s1806_s1 + $0x180] sm:$0xff]   ;;  %s1172_s30 = sshll.u32 %s1461_s15, 7 }
  0x1a   : > { %1203 = vmatpush3.bf16.msra.mxu1 %v1330_v11  ;;  %1182 = vmatprep.subr.bf16.mxu0 %v1331_v12  ;;  %v252_v32 = vld [vmem:[%s1642_s19] sm:$0xff]  ;;  %v253_v33 = vld [vmem:[%s1642_s19 + $0x8] sm:$0xff]  ;;  %v1363_v46 = vld [vmem:[%s1806_s1 + $0x150] sm:$0xff]   ;;  %s1758_s8 = scalar_lea.hbm %s1808_s3, %s1172_s30  ;;  %s1471_s15 = smov [#allocation2]  }
  0x1b   : > { %1204 = vmatprep.subr.bf16.mxu1 %v1332_v13  ;;  %v1099_v34 = vcombine.low %v252_v32, %v252_v32  ;;  %v1100_v35 = vcombine.high %v252_v32, %v252_v32  ;;  %v1101_v36 = vcombine.low %v253_v33, %v253_v33  ;;  %v1102_v37 = vcombine.high %v253_v33, %v253_v33  ;;  %v1359_v42 = vld [vmem:[%s1806_s1 + $0x148] sm:$0xff]   ;;  %v1364_v47 = vld [vmem:[%s1806_s1 + $0x1d0] sm:$0xff]   ;;  %v1367_v50 = vld [vmem:[%s1806_s1 + $0x158] sm:$0xff]   ;;  %s1395_s18 = sshll.u32 %s1471_s15, 4  ;;  %s1396_s18 = int_to_ptr.vmem [resolvable:$false] %s1395_s18 }
  0x1c   : > { %v1360_v43 = vld [vmem:[%s1806_s1 + $0x1c8] sm:$0xff]   ;;  %v1365_v48 = vld [vmem:[%s1806_s1 + $0x110] sm:$0xff]   ;;  %v1368_v51 = vld [vmem:[%s1806_s1 + $0x1d8] sm:$0xff]   ;;  %s1397_s11 = scalar_lea.vmem %s1396_s18, 256 }
  0x1d   : > { %1183 = vmatpush3.bf16.msra.mxu0 %v1333_v14  ;;  %829 = vmatprep.mubr.bf16.mxu0 %v1100_v35  ;;  %v1361_v44 = vld [vmem:[%s1806_s1 + $0x108] sm:$0xff]   ;;  %v1366_v49 = vld [vmem:[%s1806_s1 + $0x190] sm:$0xff]   ;;  %v1369_v52 = vld [vmem:[%s1806_s1 + $0x118] sm:$0xff]  }
  0x1e   : > { %1205 = vmatpush3.bf16.msra.mxu1 %v1334_v15  ;;  %1184 = vmatprep.subr.bf16.mxu0 %v1335_v16  ;;  %v1362_v45 = vld [vmem:[%s1806_s1 + $0x188] sm:$0xff]   ;;  %v1370_v53 = vld [vmem:[%s1806_s1 + $0x198] sm:$0xff]   ;;  %v1371_v54 = vld [vmem:[%s1806_s1 + $0x160] sm:$0xff]  }
  0x1f   : > { %1206 = vmatprep.subr.bf16.mxu1 %v1336_v17  ;;  %869 = vmatprep.mubr.bf16.mxu1 %v1102_v37  ;;  %v1372_v55 = vld [vmem:[%s1806_s1 + $0x1e0] sm:$0xff]   ;;  %v1375_v58 = vld [vmem:[%s1806_s1 + $0x168] sm:$0xff]   ;;  %v1379_v62 = vld [vmem:[%s1806_s1 + $0x170] sm:$0xff]  }
  0x20   : > { %v1373_v56 = vld [vmem:[%s1806_s1 + $0x120] sm:$0xff]   ;;  %v1376_v59 = vld [vmem:[%s1806_s1 + $0x1e8] sm:$0xff]   ;;  %v1380_v63 = vld [vmem:[%s1806_s1 + $0x1f0] sm:$0xff]  }
  0x21   : > { %1185 = vmatpush3.bf16.msra.mxu0 %v1337_v18  ;;  %v1374_v57 = vld [vmem:[%s1806_s1 + $0x1a0] sm:$0xff]   ;;  %v1377_v60 = vld [vmem:[%s1806_s1 + $0x128] sm:$0xff]   ;;  %v1381_v0 = vld [vmem:[%s1806_s1 + $0x130] sm:$0xff]  }
  0x22   : > { %1207 = vmatpush3.bf16.msra.mxu1 %v1338_v19  ;;  %1186 = vmatprep.subr.bf16.mxu0 %v1339_v20  ;;  %v1378_v61 = vld [vmem:[%s1806_s1 + $0x1a8] sm:$0xff]   ;;  %v1382_v1 = vld [vmem:[%s1806_s1 + $0x1b0] sm:$0xff]   ;;  %v1383_v2 = vld [vmem:[%s1806_s1 + $0x178] sm:$0xff]  }
  0x23   : > { %1208 = vmatprep.subr.bf16.mxu1 %v1340_v21  ;;  %v1384_v3 = vld [vmem:[%s1806_s1 + $0x1f8] sm:$0xff]   ;;  %v254_v6 = vld [vmem:[%s1642_s19 + $0x10] sm:$0xff]  ;;  %v384_v14 = vld [vmem:[%s1807_s2] sm:$0xff] }
  0x24   : > { %v1385_v4 = vld [vmem:[%s1806_s1 + $0x138] sm:$0xff]   ;;  %v1103_v7 = vcombine.low %v254_v6, %v254_v6  ;;  %v1104_v8 = vcombine.high %v254_v6, %v254_v6 }
  0x25   : > { %1187 = vmatpush3.bf16.msra.mxu0 %v1341_v22  ;;  %v1386_v5 = vld [vmem:[%s1806_s1 + $0x1b8] sm:$0xff]  }
  0x26   : > { %1209 = vmatpush3.bf16.msra.mxu1 %v1342_v23  ;;  %1188 = vmatprep.subr.bf16.mxu0 %v1343_v24  ;;  %v255_v9 = vld [vmem:[%s1642_s19 + $0x18] sm:$0xff]  ;;  %s228_s19 = sand.u32 1, %s1453_s13  }
  0x27   : > { %1210 = vmatprep.subr.bf16.mxu1 %v1344_v25  ;;  %v1105_v10 = vcombine.low %v255_v9, %v255_v9  ;;  %v1106_v11 = vcombine.high %v255_v9, %v255_v9  ;;  %s1096_s29 = sshll.u32 %s228_s19, 3  ;;  %s960_s9 = scalar_lea.sflag [#allocation3], %s228_s19 }
  0x28   : > { %s230_s4 = scalar_lea.vmem [#allocation2], %s1096_s29 }
  0x29   : > { %1189 = vmatpush3.bf16.msra.mxu0 %v1345_v26  ;;  %s975_s5 = sshll.u32 %s230_s4, 4  ;;  %s1760_s5 = int_to_ptr.vmem [resolvable:$true] %s975_s5 }
  0x2a   : > { %1211 = vmatpush3.bf16.msra.mxu1 %v1346_v27  ;;  %1190 = vmatprep.subr.bf16.mxu0 %v1347_v28  ;;  %s1391_s10 = scalar_lea.vmem %s1760_s5, 128  ;;  %p1398_p1 = scmp.lt.s32.totalorder %s1760_s5, %s1396_s18 }
  0x2b   : > { %1212 = vmatprep.subr.bf16.mxu1 %v1348_v29  ;;  %p1392_p12 = scmp.ne.s32.totalorder %s1760_s5, %s1391_s10  ;;  %p1399_p2 = scmp.lt.s32.totalorder %s1397_s11, %s1391_s10 }
  0x2d   : > { %1191 = vmatpush3.bf16.msra.mxu0 %v1349_v30  ;;  %p1393_p13 = pnand %p1392_p12, %p1532_p4  ;;  %p1400_p3 = por %p1399_p2, %p1398_p1 }
  0x2e   : > { %1213 = vmatpush3.bf16.msra.mxu1 %v1350_v31  ;;  %1220 = vmatprep.subr.bf16.mxu0 %v1355_v38 }
  0x2f   : > { %1242 = vmatprep.subr.bf16.mxu1 %v1356_v39  ;;  %p1394_p0 = pneg %p1393_p13 }
  0x30   : > { %830 = vmatmul.mubr.bf16.vlgmr.msra.gmra.mrb[0].mxu0 %v1099_v34 }
  0x31   : > { %870 = vmatmul.mubr.bf16.vlgmr.msra.gmra.mrb[0].mxu1 %v1101_v36  ;;  %1221 = vmatpush3.bf16.msra.mxu0 %v1357_v40  ;;  %p1401_p5 = pnand %p1400_p3, %p1394_p0 }
  0x32   : > { %1243 = vmatpush3.bf16.msra.mxu1 %v1358_v41  ;;  %1222 = vmatprep.subr.bf16.mxu0 %v1359_v42 }
  0x33   : > { %1244 = vmatprep.subr.bf16.mxu1 %v1360_v43  ;;  %909 = vmatprep.mubr.bf16.mxu0 %v1104_v8 }
  0x34   : > { %949 = vmatprep.mubr.bf16.mxu1 %v1106_v11 }
  0x35   : > { %1223 = vmatpush3.bf16.msra.mxu0 %v1361_v44 }
  0x36   : > { %1245 = vmatpush3.bf16.msra.mxu1 %v1362_v45  ;;  %1224 = vmatprep.subr.bf16.mxu0 %v1363_v46 }
  0x37   : > { %1246 = vmatprep.subr.bf16.mxu1 %v1364_v47 }
  0x39   : > { %1225 = vmatpush3.bf16.msra.mxu0 %v1365_v48 }
  0x3a   : > { %1247 = vmatpush3.bf16.msra.mxu1 %v1366_v49  ;;  %1226 = vmatprep.subr.bf16.mxu0 %v1367_v50 }
  0x3b   : > { %1248 = vmatprep.subr.bf16.mxu1 %v1368_v51 }
  0x3d   : > { %1227 = vmatpush3.bf16.msra.mxu0 %v1369_v52 }
  0x3e   : > { %1249 = vmatpush3.bf16.msra.mxu1 %v1370_v53  ;;  %1228 = vmatprep.subr.bf16.mxu0 %v1371_v54 }
  0x3f   : > { %1250 = vmatprep.subr.bf16.mxu1 %v1372_v55 }
  0x41   : > { %1229 = vmatpush3.bf16.msra.mxu0 %v1373_v56 }
  0x42   : > { %1251 = vmatpush3.bf16.msra.mxu1 %v1374_v57  ;;  %1230 = vmatprep.subr.bf16.mxu0 %v1375_v58 }
  0x43   : > { %1252 = vmatprep.subr.bf16.mxu1 %v1376_v59 }
  0x45   : > { %1231 = vmatpush3.bf16.msra.mxu0 %v1377_v60 }
  0x46   : > { %1253 = vmatpush3.bf16.msra.mxu1 %v1378_v61  ;;  %1232 = vmatprep.subr.bf16.mxu0 %v1379_v62 }
  0x47   : > { %1254 = vmatprep.subr.bf16.mxu1 %v1380_v63 }
  0x49   : > { %1233 = vmatpush3.bf16.msra.mxu0 %v1381_v0 }
  0x4a   : > { %1255 = vmatpush3.bf16.msra.mxu1 %v1382_v1  ;;  %1234 = vmatprep.subr.bf16.mxu0 %v1383_v2 }
  0x4b   : > { %1256 = vmatprep.subr.bf16.mxu1 %v1384_v3 }
  0x4d   : > { %1235 = vmatpush3.bf16.msra.mxu0 %v1385_v4 }
  0x4e   : > { %1257 = vmatpush3.bf16.msra.mxu1 %v1386_v5 }
  0x50   : > { %910 = vmatmul.mubr.bf16.vlgmr.msra.gmra.mrb[4].mxu0 %v1103_v7 }
  0x51   : > { %950 = vmatmul.mubr.bf16.vlgmr.msra.gmra.mrb[4].mxu1 %v1105_v10 }
 0x103   : > { %v1192_v12 = vpop.f32.mrb[0].mxu0 }
 0x104   : > { %v1214_v13 = vpop.f32.mrb[0].mxu1  ;;  %v1193_v15 = vpop.f32.mrb[1].mxu0 }
 0x105   : > { %v1215_v16 = vpop.f32.mrb[1].mxu1  ;;  %v1194_v17 = vadd.f32 %v1193_v15, %v1192_v12  ;;  %v1195_v19 = vpop.f32.mrb[2].mxu0 }
 0x106   : > { %v1216_v18 = vadd.f32 %v1215_v16, %v1214_v13  ;;  %v1217_v20 = vpop.f32.mrb[2].mxu1  ;;  %v1196_v21 = vpop.f32.mrb[3].mxu0 }
 0x107   : > { %v1218_v22 = vpop.f32.mrb[3].mxu1  ;;  %v832_v23 = vadd.f32 %v1194_v17, %v384_v14 }
 0x109   : > { %v872_v24 = vadd.f32 %v1216_v18, %v832_v23 }
 0x123   : > { %v1236_v25 = vpop.f32.mrb[4].mxu0 }
 0x124   : > { %v1258_v26 = vpop.f32.mrb[4].mxu1  ;;  %v1237_v27 = vpop.f32.mrb[5].mxu0 }
 0x125   : > { %v1259_v28 = vpop.f32.mrb[5].mxu1  ;;  %v1238_v29 = vadd.f32 %v1237_v27, %v1236_v25  ;;  %v1239_v31 = vpop.f32.mrb[6].mxu0 }
 0x126   : > { %v1260_v30 = vadd.f32 %v1259_v28, %v1258_v26  ;;  %v1261_v32 = vpop.f32.mrb[6].mxu1  ;;  %v1240_v33 = vpop.f32.mrb[7].mxu0 }
 0x127   : > { %v1262_v34 = vpop.f32.mrb[7].mxu1  ;;  %v912_v35 = vadd.f32 %v1238_v29, %v872_v24 }
 0x129   : > { %v952_v36 = vadd.f32 %v1260_v30, %v912_v35 }
 0x12b   : > { %958 = vst.msk [vmem:[%s230_s4] sm:$0xff] %vm957_vm0, %v952_v36 }
 0x12c   : > { %1404 = shalt.err (!%p1401_p5)
}
 0x12d   : > { %s1405_s21 = scalar_lea.hbm %s1758_s8, 128  ;;  %s1409_s27 = scalar_lea.hbm %s1808_s3, 256 }
 0x12e   : > { %p1406_p6 = scmp.ne.s32.totalorder %s1758_s8, %s1405_s21  ;;  %p1410_p10 = scmp.lt.u32.totalorder %s1758_s8, %s1808_s3 }
 0x12f   : > { %p1411_p11 = scmp.lt.u32.totalorder %s1409_s27, %s1405_s21  ;;  %p1413_p13 = scmp.lt.u32.totalorder %s1405_s21, %s1758_s8 }
 0x130   : > { %p1407_p7 = pnand %p1406_p6, %p1532_p4 }
 0x131   : > { %p1412_p12 = por %p1411_p11, %p1410_p10 }
 0x132   : > { %p1408_p9 = pneg %p1407_p7 }
 0x133   : > { %p1414_p0 = por %p1413_p13, %p1412_p12 }
 0x135   : > { %p1415_p1 = pnand %p1414_p0, %p1408_p9 }
 0x137   : > { %1418 = shalt.err (!%p1415_p1)
}
 0x138   : > { %1264 = dma.vmem_to_hbm [thread:$0]  (%p1532_p4), %s1760_s5, 128, %s1758_s8, %s960_s9  }
 0x139 PF: > { %p1270_p2 = scmp.ge.s32.totalorder %s1469_s17, 2  ;;  %s987_s29 = sand.u32 1, %s1449_s12  }
 0x13a   : > { %s988_s30 = scalar_lea.sflag [#allocation3], %s987_s29 }
 0x13b   : > { %p1267_p3 = pnand %p1270_p2, %p1539_p8 }
 0x13d   : > { %1444 = dma.done.wait (!%p1267_p3), %s988_s30, 128  }
 0x13e   : > { %1446 = vsyncadd (!%p1267_p3), %s988_s30, 4294967168  ;;  %s16_s17 = sadd.s32 1, %s1469_s17   ;;  %s1811_s12 = smov %s1453_s13 }
 0x13f   : > { %p13_p5 = scmp.ge.s32.totalorder %s16_s17, 4   ;;  %s1812_s13 = smov %s1457_s14 }
 0x140   : > { %s1813_s14 = smov %s1545_s25  ;;  %s1814_s15 = smov %s1465_s16 }
 0x141   : > { %s1815_s16 = smov %s1817_s20  ;;  %15 = sbr.rel (!%p13_p5) target bundleno = 4 (0x4), region = 73 }
 0x148   :  { %993 = vsyncpa [#allocation3], 1 }
 0x149   :  { %995 = vsyncpa [#allocation3 + $0x1], 1 }

</bundles_post_ra>
